<compile_context>
chip_gen: v5e
topology: v5e:2x2
jax: 0.10.0
libtpu: 0.0.40
codegen_flags: <defaults>
</compile_context>

<pallas_src>
import math
from functools import partial

import jax
import jax.numpy as jnp
from jax.experimental import pallas as pl
from jax.experimental.pallas import tpu as pltpu


def _leaky_relu(x, slope=0.01):
    # max(x, slope*x) == LeakyReLU(slope) for slope in (0, 1); saves a compare.
    return jnp.maximum(x, slope * x)


def critic_kernel(obs_ref, act_ref, w1o_ref, w1a_ref, b1_ref,
                  w2_ref, b2_ref, wc_ref, bc_ref, out_ref, *, lane_dense_out):
    # linear_c1 on the fused concat: [obs, act] @ w1 == obs @ w1_obs + act @ w1_act.
    # obs/act arrive already in the matmul dtype (f32, or bf16 when use_bf16);
    # accumulation is always f32.
    h1 = (jnp.dot(obs_ref[...], w1o_ref[...], preferred_element_type=jnp.float32)
          + jnp.dot(act_ref[...], w1a_ref[...], preferred_element_type=jnp.float32)
          + b1_ref[...])
    h1 = _leaky_relu(h1)                                   # f32 on the VPU

    # linear_c2 + LeakyReLU.  w2 is bf16 only on chips with a bf16 VPU path
    # (v6e/v7x); on v5e it stays f32 so the astype below is a no-op.
    h2 = jnp.dot(h1.astype(w2_ref.dtype), w2_ref[...],
                 preferred_element_type=jnp.float32) + b2_ref[...]
    h2 = _leaky_relu(h2)

    # linear_c (U -> 1): broadcast-multiply + lane reduction on VPU/XLU instead
    # of a 1-column MXU matmul.
    if lane_dense_out:
        # Lane-dense epilogue: one (1, 1, TB) unmasked store per step instead of
        # TB/8 masked vst.msk stores of a (TB, 1) column.
        v = jnp.sum(h2 * wc_ref[...], axis=-1)                       # (TB,)
        out_ref[...] = (v.reshape(out_ref.shape)
                        + bc_ref[...].reshape(1, 1, 1)).astype(out_ref.dtype)
    else:
        v = jnp.sum(h2 * wc_ref[...], axis=-1, keepdims=True) + bc_ref[...]   # (TB, 1)
        out_ref[...] = v.astype(out_ref.dtype)


def _round_up(x, m):
    return ((x + m - 1) // m) * m


def _device_kind():
    try:
        return jax.devices()[0].device_kind.lower()
    except Exception:
        return ""


def critic_forward(obs_input, action_input, params, *, block_b=4096,
                   use_bf16=False, lane_dense_out=False):
    """Pallas-backed forward of critic_NN. Returns a (B, 1) f32 value.

    block_b        : max batch rows per grid step (rounded to a multiple of 8).
    use_bf16       : stream obs/act and the big matmul weights as bf16
                     (f32 accumulation); hidden-act/w2 cast is skipped on v5e.
    lane_dense_out : write the output as lane-dense slabs (for very large B
                     where the (B, 1) masked stores show up in profiles).
    """
    kind = _device_kind()
    is_v5e = ("v5e" in kind) or ("v5 lite" in kind) or ("v5lite" in kind)
    is_v7 = "v7" in kind

    # Input stream dtype: bf16 halves the dominant HBM traffic when requested.
    in_dtype = jnp.bfloat16 if use_bf16 else jnp.float32
    obs = obs_input.astype(in_dtype)
    act = action_input.astype(in_dtype)
    B, obs_dim = obs.shape
    act_dim = act.shape[1]

    w1o, w1a = params["w1_obs"], params["w1_act"]
    b1, w2, b2 = params["b1"], params["w2"], params["b2"]
    wc_t, bc = params["wc_t"], params["bc"]          # wc_t: (1, U)
    U = w2.shape[1]

    if use_bf16:
        w1o = w1o.astype(jnp.bfloat16)
        w1a = w1a.astype(jnp.bfloat16)
        if not is_v5e:
            # v5e's VPU has no bf16 path; keep the second matmul in f32 there.
            w2 = w2.astype(jnp.bfloat16)

    # Batch tile: as large as possible (kernel is overhead/HBM-stream bound),
    # rounded to a multiple of 8 (sublane rule).  On v7x ensure >= 2 grid steps
    # so both TensorCores get work.  If several critics are evaluated per step
    # (MADDPG), stack them on a leading grid axis in one pallas_call instead of
    # calling this per agent — amortizes the fixed launch/pipeline cost.
    block_b = max(8, _round_up(block_b, 8))
    min_steps = 2 if is_v7 else 1
    if B <= block_b and min_steps == 1:
        TB = B                                       # whole batch in one step
    else:
        TB = min(block_b, _round_up(pl.cdiv(B, min_steps), 8))
        if TB >= B:
            TB = B                                   # single full-batch block
    num_tiles = pl.cdiv(B, TB)
    grid = (num_tiles,)

    def resident(shape):
        # Full-array block; same block index every grid step -> stays in VMEM.
        return pl.BlockSpec(shape, lambda i: (0, 0))

    if lane_dense_out:
        out_shape = jax.ShapeDtypeStruct((num_tiles, 1, TB), jnp.float32)
        out_spec = pl.BlockSpec((1, 1, TB), lambda i: (i, 0, 0))
    else:
        out_shape = jax.ShapeDtypeStruct((B, 1), jnp.float32)
        out_spec = pl.BlockSpec((TB, 1), lambda i: (i, 0))

    in_dim = obs_dim + act_dim
    flops = 2 * B * (in_dim * U + U * U + U)
    bytes_accessed = int(
        B * in_dim * jnp.dtype(in_dtype).itemsize            # obs/act stream
        + in_dim * U * jnp.dtype(w1o.dtype).itemsize         # w1 (split)
        + U * U * jnp.dtype(w2.dtype).itemsize               # w2
        + 4 * (3 * U + 1)                                     # b1, b2, wc, bc (f32)
        + 4 * B)                                              # output

    out = pl.pallas_call(
        partial(critic_kernel, lane_dense_out=lane_dense_out),
        out_shape=out_shape,
        grid_spec=pltpu.PrefetchScalarGridSpec(
            num_scalar_prefetch=0,
            grid=grid,
            in_specs=[
                pl.BlockSpec((TB, obs_dim), lambda i: (i, 0)),
                pl.BlockSpec((TB, act_dim), lambda i: (i, 0)),
                resident(w1o.shape), resident(w1a.shape), resident(b1.shape),
                resident(w2.shape), resident(b2.shape),
                resident(wc_t.shape), resident(bc.shape),
            ],
            out_specs=out_spec,
        ),
        compiler_params=pltpu.CompilerParams(
            # B-grid is embarrassingly parallel -> shards across v7x's 2 TCs;
            # harmless no-op on v5e/v6e.
            dimension_semantics=("parallel",),
        ),
        cost_estimate=pl.CostEstimate(
            flops=flops, transcendentals=0, bytes_accessed=bytes_accessed),
    )(obs, act, w1o, w1a, b1, w2, b2, wc_t, bc)

    if lane_dense_out:
        out = out.reshape(num_tiles * TB, 1)[:B]     # drop padded tail rows
    return out


def init_params(key, obs_dim, act_dim, num_units):
    """Deterministic init mimicking the module's reset_parameters().

    Weights: xavier_uniform with gain = calculate_gain('leaky_relu')
             = sqrt(2 / (1 + 0.01**2)), stored transposed as (in, out).
    Biases : PyTorch Linear default uniform(-1/sqrt(fan_in), 1/sqrt(fan_in)).
    w1 is pre-split by rows (obs rows / act rows) so the kernel fuses the concat.
    wc is stored transposed as (1, U) for the VPU reduce.
    """
    gain = math.sqrt(2.0 / (1.0 + 0.01 ** 2))
    in_dim = obs_dim + act_dim

    def xavier(k, fan_in, fan_out):
        limit = gain * math.sqrt(6.0 / (fan_in + fan_out))
        return jax.random.uniform(k, (fan_in, fan_out), jnp.float32, -limit, limit)

    def bias(k, fan_in, fan_out):
        bound = 1.0 / math.sqrt(fan_in)
        return jax.random.uniform(k, (1, fan_out), jnp.float32, -bound, bound)

    ks = jax.random.split(key, 6)
    w1 = xavier(ks[0], in_dim, num_units)
    return {
        "w1_obs": w1[:obs_dim],          # static row-split -> concat folded into kernel
        "w1_act": w1[obs_dim:],
        "b1": bias(ks[1], in_dim, num_units),
        "w2": xavier(ks[2], num_units, num_units),
        "b2": bias(ks[3], num_units, num_units),
        "wc_t": xavier(ks[4], num_units, 1).T,   # (1, U)
        "bc": bias(ks[5], num_units, 1),
    }


if __name__ == "__main__":
    # Small shapes consistent with the module's forward:
    #   obs_input: (B, obs_shape_n), action_input: (B, action_shape_n)
    B, OBS_DIM, ACT_DIM, NUM_UNITS = 8, 16, 8, 64

    key = jax.random.PRNGKey(0)
    k_obs, k_act, k_params = jax.random.split(key, 3)

    obs_input = jax.random.normal(k_obs, (B, OBS_DIM), jnp.float32)
    action_input = jax.random.normal(k_act, (B, ACT_DIM), jnp.float32)
    params = init_params(k_params, OBS_DIM, ACT_DIM, NUM_UNITS)

    value = jax.block_until_ready(critic_forward(obs_input, action_input, params))
    assert value.shape == (B, 1) and value.dtype == jnp.float32

    # Pure-JAX reference of the original module math.
    w1_full = jnp.concatenate([params["w1_obs"], params["w1_act"]], axis=0)

    def ref_fn(o, a):
        x = jnp.concatenate([o, a], axis=1)
        h1 = x @ w1_full + params["b1"]
        h1 = jnp.where(h1 > 0, h1, 0.01 * h1)
        h2 = h1 @ params["w2"] + params["b2"]
        h2 = jnp.where(h2 > 0, h2, 0.01 * h2)
        return h2 @ params["wc_t"].T + params["bc"]

    ref = ref_fn(obs_input, action_input)
    assert jnp.allclose(value, ref, atol=1e-4, rtol=1e-5)

    # Larger, ragged batch: exercises the multi-step grid, masked writeback of
    # the last tile, and megacore sharding on v7x.
    B2 = 1000
    ko2, ka2 = jax.random.split(jax.random.PRNGKey(1))
    obs2 = jax.random.normal(ko2, (B2, OBS_DIM), jnp.float32)
    act2 = jax.random.normal(ka2, (B2, ACT_DIM), jnp.float32)
    ref2 = ref_fn(obs2, act2)

    v2 = jax.block_until_ready(critic_forward(obs2, act2, params, block_b=512))
    assert v2.shape == (B2, 1)
    assert jnp.allclose(v2, ref2, atol=1e-4, rtol=1e-5)

    # Lane-dense output layout (opt-in epilogue optimization for very large B).
    v2ld = jax.block_until_ready(
        critic_forward(obs2, act2, params, block_b=512, lane_dense_out=True))
    assert v2ld.shape == (B2, 1)
    assert jnp.allclose(v2ld, ref2, atol=1e-4, rtol=1e-5)

    # bf16 streaming of obs/act + weights (MXU-native, f32 accumulation);
    # loose tolerance vs the f32 reference.
    v3 = jax.block_until_ready(
        critic_forward(obs2, act2, params, block_b=512, use_bf16=True))
    assert v3.shape == (B2, 1)
    assert bool(jnp.all(jnp.isfinite(v3)))
    assert jnp.allclose(v3, ref2, atol=2e-1, rtol=1e-1)

    print("KERNEL_OK")
</pallas_src>

<mosaic_0001>
module attributes {stable_mosaic.version = 11 : i64} {
  func.func @critic_kernel(%arg0: i32, %arg1: memref<8x16xf32, #tpu.memory_space<vmem>>, %arg2: memref<8x8xf32, #tpu.memory_space<vmem>>, %arg3: memref<16x64xf32, #tpu.memory_space<vmem>>, %arg4: memref<8x64xf32, #tpu.memory_space<vmem>>, %arg5: memref<1x64xf32, #tpu.memory_space<vmem>>, %arg6: memref<64x64xf32, #tpu.memory_space<vmem>>, %arg7: memref<1x64xf32, #tpu.memory_space<vmem>>, %arg8: memref<1x64xf32, #tpu.memory_space<vmem>>, %arg9: memref<1x1xf32, #tpu.memory_space<vmem>>, %arg10: memref<8x1xf32, #tpu.memory_space<vmem>>) attributes {dimension_semantics = [#tpu.dimension_semantics<parallel>], iteration_bounds = array<i64: 1>, scalar_prefetch = 0 : i64, scratch_operands = 0 : i64, tpu.core_type = #tpu.core_type<tc>, window_params = [{transform_indices = @transform_0, window_bounds = array<i64: 8, 16>}, {transform_indices = @transform_1, window_bounds = array<i64: 8, 8>}, {pipeline_mode = #tpu.pipeline_mode<synchronous>, transform_indices = @transform_2, window_bounds = array<i64: 16, 64>}, {pipeline_mode = #tpu.pipeline_mode<synchronous>, transform_indices = @transform_3, window_bounds = array<i64: 8, 64>}, {pipeline_mode = #tpu.pipeline_mode<synchronous>, transform_indices = @transform_4, window_bounds = array<i64: 1, 64>}, {pipeline_mode = #tpu.pipeline_mode<synchronous>, transform_indices = @transform_5, window_bounds = array<i64: 64, 64>}, {pipeline_mode = #tpu.pipeline_mode<synchronous>, transform_indices = @transform_6, window_bounds = array<i64: 1, 64>}, {pipeline_mode = #tpu.pipeline_mode<synchronous>, transform_indices = @transform_7, window_bounds = array<i64: 1, 64>}, {pipeline_mode = #tpu.pipeline_mode<synchronous>, transform_indices = @transform_8, window_bounds = array<i64: 1, 1>}, {transform_indices = @transform_9, window_bounds = array<i64: 8, 1>}]} {
    %c0 = arith.constant 0 : index
    %c0_0 = arith.constant 0 : index
    %0 = vector.load %arg1[%c0, %c0_0] : memref<8x16xf32, #tpu.memory_space<vmem>>, vector<8x16xf32>
    %c0_1 = arith.constant 0 : index
    %c0_2 = arith.constant 0 : index
    %1 = vector.load %arg3[%c0_1, %c0_2] : memref<16x64xf32, #tpu.memory_space<vmem>>, vector<16x64xf32>
    %cst = arith.constant dense<0.000000e+00> : vector<8x64xf32>
    %2 = tpu.matmul %0, %1, %cst {dimension_numbers = #tpu.dot_dimension_numbers<[1], [0], [0], [1], [0, 0, 1, 1], [], []>} : vector<8x16xf32>, vector<16x64xf32>, vector<8x64xf32> -> vector<8x64xf32>
    %c0_3 = arith.constant 0 : index
    %c0_4 = arith.constant 0 : index
    %3 = vector.load %arg2[%c0_3, %c0_4] : memref<8x8xf32, #tpu.memory_space<vmem>>, vector<8x8xf32>
    %c0_5 = arith.constant 0 : index
    %c0_6 = arith.constant 0 : index
    %4 = vector.load %arg4[%c0_5, %c0_6] : memref<8x64xf32, #tpu.memory_space<vmem>>, vector<8x64xf32>
    %cst_7 = arith.constant dense<0.000000e+00> : vector<8x64xf32>
    %5 = tpu.matmul %3, %4, %cst_7 {dimension_numbers = #tpu.dot_dimension_numbers<[1], [0], [0], [1], [0, 0, 1, 1], [], []>} : vector<8x8xf32>, vector<8x64xf32>, vector<8x64xf32> -> vector<8x64xf32>
    %6 = arith.addf %2, %5 : vector<8x64xf32>
    %c0_8 = arith.constant 0 : index
    %c0_9 = arith.constant 0 : index
    %7 = vector.load %arg5[%c0_8, %c0_9] : memref<1x64xf32, #tpu.memory_space<vmem>>, vector<1x64xf32>
    %8 = vector.broadcast %7 : vector<1x64xf32> to vector<8x64xf32>
    %9 = arith.addf %6, %8 : vector<8x64xf32>
    %cst_10 = arith.constant 0.00999999977 : f32
    %10 = vector.broadcast %cst_10 : f32 to vector<8x64xf32>
    %11 = arith.mulf %10, %9 : vector<8x64xf32>
    %12 = arith.maximumf %9, %11 : vector<8x64xf32>
    %c0_11 = arith.constant 0 : index
    %c0_12 = arith.constant 0 : index
    %13 = vector.load %arg6[%c0_11, %c0_12] : memref<64x64xf32, #tpu.memory_space<vmem>>, vector<64x64xf32>
    %cst_13 = arith.constant dense<0.000000e+00> : vector<8x64xf32>
    %14 = tpu.matmul %12, %13, %cst_13 {dimension_numbers = #tpu.dot_dimension_numbers<[1], [0], [0], [1], [0, 0, 1, 1], [], []>} : vector<8x64xf32>, vector<64x64xf32>, vector<8x64xf32> -> vector<8x64xf32>
    %c0_14 = arith.constant 0 : index
    %c0_15 = arith.constant 0 : index
    %15 = vector.load %arg7[%c0_14, %c0_15] : memref<1x64xf32, #tpu.memory_space<vmem>>, vector<1x64xf32>
    %16 = vector.broadcast %15 : vector<1x64xf32> to vector<8x64xf32>
    %17 = arith.addf %14, %16 : vector<8x64xf32>
    %cst_16 = arith.constant 0.00999999977 : f32
    %18 = vector.broadcast %cst_16 : f32 to vector<8x64xf32>
    %19 = arith.mulf %18, %17 : vector<8x64xf32>
    %20 = arith.maximumf %17, %19 : vector<8x64xf32>
    %c0_17 = arith.constant 0 : index
    %c0_18 = arith.constant 0 : index
    %21 = vector.load %arg8[%c0_17, %c0_18] : memref<1x64xf32, #tpu.memory_space<vmem>>, vector<1x64xf32>
    %22 = vector.broadcast %21 : vector<1x64xf32> to vector<8x64xf32>
    %23 = arith.mulf %20, %22 : vector<8x64xf32>
    %cst_19 = arith.constant dense<0.000000e+00> : vector<8xf32>
    %24 = vector.multi_reduction <add>, %23, %cst_19 [1] : vector<8x64xf32> to vector<8xf32>
    %25 = vector.shape_cast %24 : vector<8xf32> to vector<8x1xf32>
    %c0_20 = arith.constant 0 : index
    %c0_21 = arith.constant 0 : index
    %26 = vector.load %arg9[%c0_20, %c0_21] : memref<1x1xf32, #tpu.memory_space<vmem>>, vector<1x1xf32>
    %27 = vector.broadcast %26 : vector<1x1xf32> to vector<8x1xf32>
    %28 = arith.addf %25, %27 : vector<8x1xf32>
    %c0_22 = arith.constant 0 : index
    %c0_23 = arith.constant 0 : index
    %29 = vector.load %arg10[%c0_22, %c0_23] : memref<8x1xf32, #tpu.memory_space<vmem>>, vector<8x1xf32>
    tpu.vector_store %arg10[%c0_22, %c0_23], %28 {strides = array<i32>} : memref<8x1xf32, #tpu.memory_space<vmem>>, vector<8x1xf32>,
    return
  }
  func.func @transform_0(%arg0: i32) -> (i32, i32) {
    %c0_i32 = arith.constant 0 : i32
    %c0_i32_0 = arith.constant 0 : i32
    return %arg0, %c0_i32 : i32, i32
  }
  func.func @transform_1(%arg0: i32) -> (i32, i32) {
    %c0_i32 = arith.constant 0 : i32
    %c0_i32_0 = arith.constant 0 : i32
    return %arg0, %c0_i32 : i32, i32
  }
  func.func @transform_2(%arg0: i32) -> (i32, i32) {
    %c0_i32 = arith.constant 0 : i32
    %c0_i32_0 = arith.constant 0 : i32
    %c0_i32_1 = arith.constant 0 : i32
    return %c0_i32, %c0_i32_0 : i32, i32
  }
  func.func @transform_3(%arg0: i32) -> (i32, i32) {
    %c0_i32 = arith.constant 0 : i32
    %c0_i32_0 = arith.constant 0 : i32
    %c0_i32_1 = arith.constant 0 : i32
    return %c0_i32, %c0_i32_0 : i32, i32
  }
  func.func @transform_4(%arg0: i32) -> (i32, i32) {
    %c0_i32 = arith.constant 0 : i32
    %c0_i32_0 = arith.constant 0 : i32
    %c0_i32_1 = arith.constant 0 : i32
    return %c0_i32, %c0_i32_0 : i32, i32
  }
  func.func @transform_5(%arg0: i32) -> (i32, i32) {
    %c0_i32 = arith.constant 0 : i32
    %c0_i32_0 = arith.constant 0 : i32
    %c0_i32_1 = arith.constant 0 : i32
    return %c0_i32, %c0_i32_0 : i32, i32
  }
  func.func @transform_6(%arg0: i32) -> (i32, i32) {
    %c0_i32 = arith.constant 0 : i32
    %c0_i32_0 = arith.constant 0 : i32
    %c0_i32_1 = arith.constant 0 : i32
    return %c0_i32, %c0_i32_0 : i32, i32
  }
  func.func @transform_7(%arg0: i32) -> (i32, i32) {
    %c0_i32 = arith.constant 0 : i32
    %c0_i32_0 = arith.constant 0 : i32
    %c0_i32_1 = arith.constant 0 : i32
    return %c0_i32, %c0_i32_0 : i32, i32
  }
  func.func @transform_8(%arg0: i32) -> (i32, i32) {
    %c0_i32 = arith.constant 0 : i32
    %c0_i32_0 = arith.constant 0 : i32
    %c0_i32_1 = arith.constant 0 : i32
    return %c0_i32, %c0_i32_0 : i32, i32
  }
  func.func @transform_9(%arg0: i32) -> (i32, i32) {
    %c0_i32 = arith.constant 0 : i32
    %c0_i32_0 = arith.constant 0 : i32
    return %arg0, %c0_i32 : i32, i32
  }
}

</mosaic_0001>

<bundles_post_ra>
// kernel: tpu_custom_call.1
= control target key start
LH: loop header
LB: loop body
LE: loop exit
PB: predicated region body
PF: predicated region fallthrough
CT: control target
= control target key end

     0   :  { %s453_s0 = inlined_call_operand.hbm [shape: f32[8,16], index: 0, kind: input, shape index: {}]   ;;  %s454_s1 = inlined_call_operand.hbm [shape: f32[8,8], index: 1, kind: input, shape index: {}]   ;;  %s455_s2 = inlined_call_operand.hbm [shape: f32[16,64], index: 2, kind: input, shape index: {}]   ;;  %s456_s3 = inlined_call_operand.hbm [shape: f32[8,64], index: 3, kind: input, shape index: {}]   ;;  %s457_s4 = inlined_call_operand.vmem [shape: f32[1,64], index: 4, kind: input, shape index: {}]   ;;  %s458_s5 = inlined_call_operand.hbm [shape: f32[64,64], index: 5, kind: input, shape index: {}]   ;;  %s459_s6 = inlined_call_operand.vmem [shape: f32[1,64], index: 6, kind: input, shape index: {}]   ;;  %s460_s7 = inlined_call_operand.vmem [shape: f32[1,64], index: 7, kind: input, shape index: {}]   ;;  %s461_s8 = inlined_call_operand.<no memory space> [shape: f32[1,1], index: 8, kind: input, shape index: {}]   ;;  %s462_s9 = inlined_call_operand.vmem [shape: f32[8,1], index: 9, kind: output, shape index: {}]  }
   0x1   :  { %v14_v0 = vstv %s461_s8 }
   0x2   :  { %15 = vst [vmem:[#allocation2] sm:$0x1] %v14_v0 }
   0x3   :  { %16 = vsyncpa [#allocation4], 0 }
   0x4   :  { %17 = vsyncpa [#allocation6], 0  ;;  %s35_s13 = sshll.u32 %s454_s1, 4  ;;  %s36_s13 = int_to_ptr.hbm [resolvable:$true] %s35_s13 }
   0x5   :  { %18 = vsyncpa [#allocation9], 0  ;;  %s366_s14 = smov [#allocation5]   ;;  %s59_s18 = sshll.u32 %s456_s3, 4  ;;  %s60_s18 = int_to_ptr.hbm [resolvable:$true] %s59_s18 }
   0x6   :  { %s37_s15 = sshll.u32 %s366_s14, 4  ;;  %s367_s19 = smov [#allocation8]   ;;  %s38_s15 = int_to_ptr.vmem [resolvable:$true] %s37_s15 }
   0x7   :  { %40 = dma.hbm_to_vmem [thread:$0]  %s36_s13, 128, %s38_s15, [#allocation6]  }
   0x8   :  { %s61_s8 = sshll.u32 %s367_s19, 4  ;;  %s24_s22 = sshll.u32 %s453_s0, 4  ;;  %s62_s8 = int_to_ptr.vmem [resolvable:$true] %s61_s8  ;;  %s25_s22 = int_to_ptr.hbm [resolvable:$true] %s24_s22 }
   0x9   :  { %64 = dma.hbm_to_vmem [thread:$0]  %s60_s18, 128, %s62_s8, [#allocation9]  }
   0xa   :  { %s45_s24 = sshll.u32 %s455_s2, 4  ;;  %s368_s25 = smov [#allocation3]   ;;  %s46_s24 = int_to_ptr.hbm [resolvable:$true] %s45_s24 }
   0xb   :  { %s26_s26 = sshll.u32 %s368_s25, 4  ;;  %s369_s3 = smov [#allocation7]   ;;  %s27_s26 = int_to_ptr.vmem [resolvable:$true] %s26_s26 }
   0xc   :  { %29 = dma.hbm_to_vmem [thread:$0]  %s25_s22, 128, %s27_s26, [#allocation4]  }
   0xd   :  { %s47_s27 = sshll.u32 %s369_s3, 4  ;;  %s370_s28 = smov 128   ;;  %s48_s27 = int_to_ptr.vmem [resolvable:$true] %s47_s27 }
   0xe   :  { %s371_s29 = smov 8   ;;  %s71_s10 = sshll.u32 %s458_s5, 4  ;;  %s72_s10 = int_to_ptr.hbm [resolvable:$true] %s71_s10 }
   0xf   :  { %53 = dma.hbm_to_vmem [thread:$0]  %s46_s24, 256, %s48_s27, [#allocation6], %s370_s28, %s370_s28, %s371_s29  }
  0x10   :  { %s372_s11 = smov [#allocation10]  }
  0x11   :  { %s73_s12 = sshll.u32 %s372_s11, 4  ;;  %s74_s12 = int_to_ptr.vmem [resolvable:$true] %s73_s12 }
  0x12   :  { %79 = dma.hbm_to_vmem [thread:$0]  %s72_s10, 1024, %s74_s12, [#allocation9], %s370_s28, %s370_s28, %s371_s29  }
  0x13   :  { %360 = dma.done.wait [#allocation4], 128  }
  0x14   :  { %361 = vsyncadd [#allocation4], 4294967168 }
  0x15   :  { %362 = dma.done.wait [#allocation6], 384  }
  0x16   :  { %363 = vsyncadd [#allocation6], 4294966912 }
  0x17   :  { %364 = dma.done.wait [#allocation9], 1152  }
  0x18   :  { %365 = vsyncadd [#allocation9], 4294966144  ;;  %vm111_vm0 = vcmask 64512   ;;  %v108_v1 = vld [vmem:[#allocation7 + $0x8] sm:$0xff]  ;;  %v110_v2 = vld [vmem:[#allocation8] sm:$0xff]  ;;  %vm135_vm1 = vcmask 130048  }
  0x19   :  { %v107_v3 = vld [vmem:[#allocation7] sm:$0xff]  ;;  %153 = vmatpush.msra.mxu1 %v108_v1  ;;  %130 = vmatpush.msra.mxu0 %v110_v2  ;;  %v109_v4 = vld [vmem:[#allocation5] sm:$0xff]  ;;  %v106_v5 = vld [vmem:[#allocation3] sm:$0xff]  ;;  %vm178_vm2 = vcmask 523264   ;;  %vm217_vm3 = vcmask 7168  }
  0x1a   :  { %v173_v6 = vld [vmem:[#allocation10 + $0x38] sm:$0xff]  ;;  %226 = vmatmul.msk.f32.vlgmr.msra.gmra.mxu0 %vm111_vm0, %v109_v4  ;;  %v172_v7 = vld [vmem:[#allocation10 + $0x30] sm:$0xff]  ;;  %v171_v8 = vld [vmem:[#allocation10 + $0x28] sm:$0xff] }
  0x1b   :  { %190 = vmatpush.msra.mxu2 %v173_v6  ;;  %154 = vmatpush.msra.mxu1 %v107_v3  ;;  %v170_v9 = vld [vmem:[#allocation10 + $0x20] sm:$0xff]  ;;  %v169_v10 = vld [vmem:[#allocation10 + $0x18] sm:$0xff]  ;;  %v168_v11 = vld [vmem:[#allocation10 + $0x10] sm:$0xff] }
  0x1c   :  { %227 = vmatmul.msk.f32.vlgmr.msra.gmra.mxu1 %vm135_vm1, %v106_v5  ;;  %v167_v12 = vld [vmem:[#allocation10 + $0x8] sm:$0xff]  ;;  %v166_v13 = vld [vmem:[#allocation10] sm:$0xff]  ;;  %v236_v15 = vld [vmem:[%s457_s4] ss:$0 sm:$0xff] }
  0x1d   :  { %191 = vmatpush.msra.mxu2 %v172_v7  ;;  %v237_v21 = vld [vmem:[%s459_s6] ss:$0 sm:$0xff] }
  0x1e   :  { %v238_v25 = vld [vmem:[%s460_s7] ss:$0 sm:$0xff] }
  0x1f   :  { %192 = vmatpush.msra.mxu2 %v171_v8  ;;  %v239_v29 = vld [vmem:[#allocation2] ss:$0 sm:$0xff] }
  0x21   :  { %193 = vmatpush.msra.mxu2 %v170_v9 }
  0x23   :  { %194 = vmatpush.msra.mxu2 %v169_v10 }
  0x25   :  { %195 = vmatpush.msra.mxu2 %v168_v11 }
  0x27   :  { %196 = vmatpush.msra.mxu2 %v167_v12 }
  0x29   :  { %197 = vmatpush.msra.mxu2 %v166_v13 }
  0x97   :  { %v132_v14 = vpop.f32.mrf.mxu0 }
  0x99   :  { %v156_v16 = vpop.f32.mrf.mxu1 }
  0x9a   :  { %v157_v17 = vadd.f32 %v156_v16, %v132_v14 }
  0x9c   :  { %v163_v18 = vadd.f32 %v236_v15, %v157_v17 }
  0x9e   :  { %v164_v19 = vmul.f32 0.01, %v163_v18 }
  0xa0   :  { %v165_v20 = vmax.f32 %v163_v18, %v164_v19 }
  0xa2   :  { %228 = vmatmul.msk.f32.vlgmr.msra.gmra.mxu2 %vm178_vm2, %v165_v20 }
 0x125   :  { %v199_v22 = vpop.f32.mrf.mxu2 }
 0x126   :  { %v200_v23 = vadd.f32 %v237_v21, %v199_v22 }
 0x128   :  { %v202_v24 = vmul.f32 0.01, %v200_v23 }
 0x12a   :  { %v203_v26 = vmax.f32 %v200_v23, %v202_v24 }
 0x12c   :  { %v208_v27 = vmul.f32 %v238_v25, %v203_v26 }
 0x12e   :  { %v209_v28 = vsel %vm178_vm2, %v208_v27, 0.0 }
 0x12f   :  { %210 = vadd.xlane.f32.xlu0 %v209_v28 }
 0x1a2   :  { %v211_v30 = vpop.xlane.xlu0 %210 }
 0x1a3   :  { %v216_v31 = vadd.f32 %v239_v29, %v211_v30 }
 0x1a5   :  { %218 = vst.msk [vmem:[%s462_s9] sm:$0xff] %vm217_vm3, %v216_v31 }
 0x1a6   :  { %223 = vsyncpa [#allocation4], 1 }
 0x1a7   :  { %224 = vsyncpa [#allocation6], 1 }
 0x1a8   :  { %225 = vsyncpa [#allocation9], 1 }

</bundles_post_ra>
